<compile_context>
chip_gen: v7x
topology: tpu7x:2x2x1
jax: 0.10.0
libtpu: 0.0.40
codegen_flags: <defaults>
</compile_context>

<pallas_src>
import numpy as np
import jax
import jax.numpy as jnp
from jax.experimental import pallas as pl
from jax.experimental.pallas import tpu as pltpu

# ---- FSQ static configuration (matches FSQ.__init__) ------------------------
LEVELS = [8, 5, 5, 5]          # levels per codebook dimension
CODEBOOK_DIM = len(LEVELS)     # 4
NUM_CODEBOOKS = 1
DIM = 32                       # self.dim != effective_codebook_dim -> has projections
EPS = 1e-3

# ---- compile-time FSQ constants (pure functions of LEVELS / EPS) ------------
_LEVELS_F = np.array(LEVELS, dtype=np.float32)
_HALF_L = ((_LEVELS_F - 1.0) * (1.0 + EPS) / 2.0).reshape(CODEBOOK_DIM, 1).astype(np.float32)
_OFFSET = np.where(np.array(LEVELS) % 2 == 0, 0.5, 0.0).astype(np.float32).reshape(CODEBOOK_DIM, 1)
_SHIFT = np.arctanh(_OFFSET / _HALF_L).astype(np.float32)
_HALF_WIDTH = np.floor(_LEVELS_F / 2.0).reshape(CODEBOOK_DIM, 1).astype(np.float32)  # levels // 2
_INV_HALF_WIDTH = (1.0 / _HALF_WIDTH).astype(np.float32)   # exact (half_width are powers of two)
_BASIS = np.cumprod([1] + LEVELS[:-1]).astype(np.float32).reshape(CODEBOOK_DIM, 1)
# codes_to_indices: sum((q + half_width) * basis) = sum(q * basis) + _IDX_OFFSET
_IDX_OFFSET = float(np.sum(_HALF_WIDTH * _BASIS))          # = 500.0, scalar literal in-kernel
# Max index = prod(LEVELS) - 1 = 999 << 2^24, so the f32 index arithmetic is exact.


def fsq_kernel(z_ref, w_in_ref, b_in_ref, w_out_ref, b_out_ref,
               half_l_ref, offset_ref, basis_ref, out_ref, idx_ref):
    # z tile: (1, DIM, T) -> (DIM, T); tokens on lanes, features on sublanes.
    z = z_ref[0].astype(jnp.float32)

    # project_in (shift already folded into bias): (4,32) @ (32,T) + (4,1) -> (4,T)
    zp = jnp.dot(w_in_ref[...].astype(jnp.float32), z,
                 preferred_element_type=jnp.float32) + b_in_ref[...]

    # bound(z): tanh(z + shift) * half_l - offset  (shift folded into zp)
    bounded = jnp.tanh(zp) * half_l_ref[...] - offset_ref[...]
    quantized = jnp.round(bounded)                       # integer-valued f32, (4, T)

    # codes_to_indices: sum((quantized + half_width) * basis)
    #                 = sum(quantized * basis) + sum(half_width * basis)
    idx = jnp.sum(quantized * basis_ref[...], axis=0, keepdims=True) + _IDX_OFFSET  # (1, T)
    idx_ref[0] = idx.astype(jnp.int32)

    # project_out on codes = quantized / half_width; 1/half_width is folded
    # into W_out on the host (exact power-of-two scaling), so multiply the raw
    # quantized values: (32,4) @ (4,T) + (32,1) -> (32,T)
    out = jnp.dot(w_out_ref[...].astype(jnp.float32), quantized,
                  preferred_element_type=jnp.float32) + b_out_ref[...]
    out_ref[0] = out.astype(out_ref.dtype)


def fsq_forward(z, w_in, b_in, w_out, b_out, tile_n=16384):
    """FSQ forward.

    z:     (b, DIM, n) channel-first float32
    w_in:  (CODEBOOK_DIM, DIM)  -- PyTorch Linear(DIM -> CODEBOOK_DIM).weight
    b_in:  (CODEBOOK_DIM,)
    w_out: (DIM, CODEBOOK_DIM)  -- PyTorch Linear(CODEBOOK_DIM -> DIM).weight
    b_out: (DIM,)

    Returns (out (b, DIM, n), indices (b, n) int32).
    """
    b, d, n = z.shape
    assert d == DIM

    # Token tile: biggest that fits comfortably in default scoped VMEM
    # (~8.3 MiB double-buffered at 16384), full extent when n is small, and
    # shrunk if the grid would be too small to feed both v7x TensorCores.
    if n <= tile_n:
        tn = n
    else:
        tn = tile_n                                  # multiple of 128
        while b * ((n + tn - 1) // tn) < 4 and tn > 1024:
            tn //= 2                                 # stays a multiple of 128

    num_tiles = (n + tn - 1) // tn                   # ragged tail handled by edge blocks
    grid = (b, num_tiles)

    # Host-side constant folding (all exact or 1-ulp-level reassociations):
    b_in_c = (b_in.reshape(CODEBOOK_DIM, 1) + jnp.asarray(_SHIFT)).astype(jnp.float32)
    w_out_c = (w_out * jnp.asarray(_INV_HALF_WIDTH.reshape(1, CODEBOOK_DIM))).astype(jnp.float32)
    b_out_c = b_out.reshape(DIM, 1).astype(jnp.float32)
    half_l_c = jnp.asarray(_HALF_L)
    offset_c = jnp.asarray(_OFFSET)
    basis_c = jnp.asarray(_BASIS)

    const2d = lambda bi, ti: (0, 0)

    out, idx3 = pl.pallas_call(
        fsq_kernel,
        out_shape=(
            jax.ShapeDtypeStruct((b, d, n), z.dtype),
            jax.ShapeDtypeStruct((b, 1, n), jnp.int32),
        ),
        grid=grid,
        in_specs=[
            pl.BlockSpec((1, d, tn), lambda bi, ti: (bi, 0, ti)),   # z tile
            pl.BlockSpec((CODEBOOK_DIM, d), const2d),               # W_in
            pl.BlockSpec((CODEBOOK_DIM, 1), const2d),               # b_in + shift
            pl.BlockSpec((d, CODEBOOK_DIM), const2d),               # W_out / half_width
            pl.BlockSpec((d, 1), const2d),                          # b_out
            pl.BlockSpec((CODEBOOK_DIM, 1), const2d),               # half_l
            pl.BlockSpec((CODEBOOK_DIM, 1), const2d),               # offset
            pl.BlockSpec((CODEBOOK_DIM, 1), const2d),               # basis
        ],
        out_specs=(
            pl.BlockSpec((1, d, tn), lambda bi, ti: (bi, 0, ti)),   # out tile
            pl.BlockSpec((1, 1, tn), lambda bi, ti: (bi, 0, ti)),   # idx tile (lane-dense)
        ),
        compiler_params=pltpu.CompilerParams(
            dimension_semantics=("parallel", "parallel")),
    )(z, w_in, b_in_c, w_out_c, b_out_c, half_l_c, offset_c, basis_c)

    indices = idx3.reshape(b, n)     # contiguous squeeze of the singleton dim
    return out, indices


def _reference_fsq(z, w_in, b_in, w_out, b_out):
    """Pure-JAX reference mirroring the PyTorch forward."""
    b, d, n = z.shape
    zr = jnp.transpose(z, (0, 2, 1)).reshape(b * n, d)
    zp = zr @ w_in.T + b_in
    levels = jnp.array(LEVELS, dtype=jnp.float32)
    half_l = (levels - 1.0) * (1.0 + EPS) / 2.0
    offset = jnp.where(jnp.array(LEVELS) % 2 == 0, 0.5, 0.0)
    shift = jnp.arctanh(offset / half_l)
    half_width = jnp.floor(levels / 2.0)
    basis = jnp.array(np.cumprod([1] + LEVELS[:-1]), dtype=np.float32)
    bounded = jnp.tanh(zp + shift) * half_l - offset
    codes = jnp.round(bounded) / half_width
    idx = jnp.sum((codes * half_width + half_width) * basis, axis=-1).astype(jnp.int32)
    out = codes @ w_out.T + b_out
    out = jnp.transpose(out.reshape(b, n, d), (0, 2, 1))
    return out, idx.reshape(b, n)


if __name__ == "__main__":
    key = jax.random.PRNGKey(0)
    k_z, k_wi, k_bi, k_wo, k_bo = jax.random.split(key, 5)

    B, N = 2, 16
    z = jax.random.normal(k_z, (B, DIM, N), dtype=jnp.float32)        # (b, d, n) channel-first

    # project_in: Linear(DIM -> CODEBOOK_DIM); project_out: Linear(CODEBOOK_DIM -> DIM)
    w_in = 0.1 * jax.random.normal(k_wi, (CODEBOOK_DIM, DIM), dtype=jnp.float32)
    b_in = 0.1 * jax.random.normal(k_bi, (CODEBOOK_DIM,), dtype=jnp.float32)
    w_out = 0.1 * jax.random.normal(k_wo, (DIM, CODEBOOK_DIM), dtype=jnp.float32)
    b_out = 0.1 * jax.random.normal(k_bo, (DIM,), dtype=jnp.float32)

    out, indices = fsq_forward(z, w_in, b_in, w_out, b_out)
    jax.block_until_ready(out)
    jax.block_until_ready(indices)

    out_ref, idx_ref = _reference_fsq(z, w_in, b_in, w_out, b_out)
    np.testing.assert_allclose(np.asarray(out), np.asarray(out_ref), rtol=1e-5, atol=1e-5)
    np.testing.assert_array_equal(np.asarray(indices), np.asarray(idx_ref))

    assert out.shape == (B, DIM, N) and indices.shape == (B, N)
    # TODO(synk): round_ste straight-through gradient is forward-only here (no custom VJP).
    print("KERNEL_OK")
</pallas_src>

<mosaic_0001>
module attributes {stable_mosaic.version = 11 : i64} {
  func.func @fsq_kernel(%arg0: i32, %arg1: i32, %arg2: memref<1x32x16xf32, #tpu.memory_space<vmem>>, %arg3: memref<4x32xf32, #tpu.memory_space<vmem>>, %arg4: memref<4x1xf32, #tpu.memory_space<vmem>>, %arg5: memref<32x4xf32, #tpu.memory_space<vmem>>, %arg6: memref<32x1xf32, #tpu.memory_space<vmem>>, %arg7: memref<4x1xf32, #tpu.memory_space<vmem>>, %arg8: memref<4x1xf32, #tpu.memory_space<vmem>>, %arg9: memref<4x1xf32, #tpu.memory_space<vmem>>, %arg10: memref<1x32x16xf32, #tpu.memory_space<vmem>>, %arg11: memref<1x1x16xi32, #tpu.memory_space<vmem>>) attributes {dimension_semantics = [#tpu.dimension_semantics<parallel>, #tpu.dimension_semantics<parallel>], iteration_bounds = array<i64: 2, 1>, scalar_prefetch = 0 : i64, scratch_operands = 0 : i64, tpu.core_type = #tpu.core_type<tc>, window_params = [{transform_indices = @transform_0, window_bounds = array<i64: 1, 32, 16>}, {pipeline_mode = #tpu.pipeline_mode<synchronous>, transform_indices = @transform_1, window_bounds = array<i64: 4, 32>}, {pipeline_mode = #tpu.pipeline_mode<synchronous>, transform_indices = @transform_2, window_bounds = array<i64: 4, 1>}, {pipeline_mode = #tpu.pipeline_mode<synchronous>, transform_indices = @transform_3, window_bounds = array<i64: 32, 4>}, {pipeline_mode = #tpu.pipeline_mode<synchronous>, transform_indices = @transform_4, window_bounds = array<i64: 32, 1>}, {pipeline_mode = #tpu.pipeline_mode<synchronous>, transform_indices = @transform_5, window_bounds = array<i64: 4, 1>}, {pipeline_mode = #tpu.pipeline_mode<synchronous>, transform_indices = @transform_6, window_bounds = array<i64: 4, 1>}, {pipeline_mode = #tpu.pipeline_mode<synchronous>, transform_indices = @transform_7, window_bounds = array<i64: 4, 1>}, {transform_indices = @transform_8, window_bounds = array<i64: 1, 32, 16>}, {transform_indices = @transform_9, window_bounds = array<i64: 1, 1, 16>}]} {
    %c0 = arith.constant 0 : index
    %c0_0 = arith.constant 0 : index
    %c0_1 = arith.constant 0 : index
    %0 = vector.load %arg2[%c0, %c0_0, %c0_1] : memref<1x32x16xf32, #tpu.memory_space<vmem>>, vector<1x32x16xf32>
    %1 = vector.shape_cast %0 : vector<1x32x16xf32> to vector<32x16xf32>
    %c0_2 = arith.constant 0 : index
    %c0_3 = arith.constant 0 : index
    %2 = vector.load %arg3[%c0_2, %c0_3] : memref<4x32xf32, #tpu.memory_space<vmem>>, vector<4x32xf32>
    %cst = arith.constant dense<0.000000e+00> : vector<4x16xf32>
    %3 = tpu.matmul %2, %1, %cst {dimension_numbers = #tpu.dot_dimension_numbers<[1], [0], [0], [1], [0, 0, 1, 1], [], []>} : vector<4x32xf32>, vector<32x16xf32>, vector<4x16xf32> -> vector<4x16xf32>
    %c0_4 = arith.constant 0 : index
    %c0_5 = arith.constant 0 : index
    %4 = vector.load %arg4[%c0_4, %c0_5] : memref<4x1xf32, #tpu.memory_space<vmem>>, vector<4x1xf32>
    %5 = vector.broadcast %4 : vector<4x1xf32> to vector<4x16xf32>
    %6 = arith.addf %3, %5 : vector<4x16xf32>
    %7 = math.tanh %6 : vector<4x16xf32>
    %c0_6 = arith.constant 0 : index
    %c0_7 = arith.constant 0 : index
    %8 = vector.load %arg7[%c0_6, %c0_7] : memref<4x1xf32, #tpu.memory_space<vmem>>, vector<4x1xf32>
    %9 = vector.broadcast %8 : vector<4x1xf32> to vector<4x16xf32>
    %10 = arith.mulf %7, %9 : vector<4x16xf32>
    %c0_8 = arith.constant 0 : index
    %c0_9 = arith.constant 0 : index
    %11 = vector.load %arg8[%c0_8, %c0_9] : memref<4x1xf32, #tpu.memory_space<vmem>>, vector<4x1xf32>
    %12 = vector.broadcast %11 : vector<4x1xf32> to vector<4x16xf32>
    %13 = arith.subf %10, %12 : vector<4x16xf32>
    %14 = math.roundeven %13 : vector<4x16xf32>
    %c0_10 = arith.constant 0 : index
    %c0_11 = arith.constant 0 : index
    %15 = vector.load %arg9[%c0_10, %c0_11] : memref<4x1xf32, #tpu.memory_space<vmem>>, vector<4x1xf32>
    %16 = vector.broadcast %15 : vector<4x1xf32> to vector<4x16xf32>
    %17 = arith.mulf %14, %16 : vector<4x16xf32>
    %cst_12 = arith.constant dense<0.000000e+00> : vector<16xf32>
    %18 = vector.multi_reduction <add>, %17, %cst_12 [0] : vector<4x16xf32> to vector<16xf32>
    %19 = vector.shape_cast %18 : vector<16xf32> to vector<1x16xf32>
    %cst_13 = arith.constant 5.000000e+02 : f32
    %20 = vector.broadcast %cst_13 : f32 to vector<1x16xf32>
    %21 = arith.addf %19, %20 : vector<1x16xf32>
    %22 = arith.fptosi %21 : vector<1x16xf32> to vector<1x16xi32>
    %c0_14 = arith.constant 0 : index
    %c0_15 = arith.constant 0 : index
    %c0_16 = arith.constant 0 : index
    %23 = vector.load %arg11[%c0_14, %c0_15, %c0_16] : memref<1x1x16xi32, #tpu.memory_space<vmem>>, vector<1x1x16xi32>
    %24 = vector.shape_cast %23 : vector<1x1x16xi32> to vector<1x16xi32>
    %25 = vector.shape_cast %22 : vector<1x16xi32> to vector<1x1x16xi32>
    tpu.vector_store %arg11[%c0_14, %c0_15, %c0_16], %25 {strides = array<i32>} : memref<1x1x16xi32, #tpu.memory_space<vmem>>, vector<1x1x16xi32>,
    %c0_17 = arith.constant 0 : index
    %c0_18 = arith.constant 0 : index
    %26 = vector.load %arg5[%c0_17, %c0_18] : memref<32x4xf32, #tpu.memory_space<vmem>>, vector<32x4xf32>
    %cst_19 = arith.constant dense<0.000000e+00> : vector<32x16xf32>
    %27 = tpu.matmul %26, %14, %cst_19 {dimension_numbers = #tpu.dot_dimension_numbers<[1], [0], [0], [1], [0, 0, 1, 1], [], []>} : vector<32x4xf32>, vector<4x16xf32>, vector<32x16xf32> -> vector<32x16xf32>
    %c0_20 = arith.constant 0 : index
    %c0_21 = arith.constant 0 : index
    %28 = vector.load %arg6[%c0_20, %c0_21] : memref<32x1xf32, #tpu.memory_space<vmem>>, vector<32x1xf32>
    %29 = vector.broadcast %28 : vector<32x1xf32> to vector<32x16xf32>
    %30 = arith.addf %27, %29 : vector<32x16xf32>
    %c0_22 = arith.constant 0 : index
    %c0_23 = arith.constant 0 : index
    %c0_24 = arith.constant 0 : index
    %31 = vector.load %arg10[%c0_22, %c0_23, %c0_24] : memref<1x32x16xf32, #tpu.memory_space<vmem>>, vector<1x32x16xf32>
    %32 = vector.shape_cast %31 : vector<1x32x16xf32> to vector<32x16xf32>
    %33 = vector.shape_cast %30 : vector<32x16xf32> to vector<1x32x16xf32>
    tpu.vector_store %arg10[%c0_22, %c0_23, %c0_24], %33 {strides = array<i32>} : memref<1x32x16xf32, #tpu.memory_space<vmem>>, vector<1x32x16xf32>,
    return
  }
  func.func @transform_0(%arg0: i32, %arg1: i32) -> (i32, i32, i32) {
    %c0_i32 = arith.constant 0 : i32
    %c0_i32_0 = arith.constant 0 : i32
    return %arg0, %c0_i32, %arg1 : i32, i32, i32
  }
  func.func @transform_1(%arg0: i32, %arg1: i32) -> (i32, i32) {
    %c0_i32 = arith.constant 0 : i32
    %c0_i32_0 = arith.constant 0 : i32
    %c0_i32_1 = arith.constant 0 : i32
    return %c0_i32, %c0_i32_0 : i32, i32
  }
  func.func @transform_2(%arg0: i32, %arg1: i32) -> (i32, i32) {
    %c0_i32 = arith.constant 0 : i32
    %c0_i32_0 = arith.constant 0 : i32
    %c0_i32_1 = arith.constant 0 : i32
    return %c0_i32, %c0_i32_0 : i32, i32
  }
  func.func @transform_3(%arg0: i32, %arg1: i32) -> (i32, i32) {
    %c0_i32 = arith.constant 0 : i32
    %c0_i32_0 = arith.constant 0 : i32
    %c0_i32_1 = arith.constant 0 : i32
    return %c0_i32, %c0_i32_0 : i32, i32
  }
  func.func @transform_4(%arg0: i32, %arg1: i32) -> (i32, i32) {
    %c0_i32 = arith.constant 0 : i32
    %c0_i32_0 = arith.constant 0 : i32
    %c0_i32_1 = arith.constant 0 : i32
    return %c0_i32, %c0_i32_0 : i32, i32
  }
  func.func @transform_5(%arg0: i32, %arg1: i32) -> (i32, i32) {
    %c0_i32 = arith.constant 0 : i32
    %c0_i32_0 = arith.constant 0 : i32
    %c0_i32_1 = arith.constant 0 : i32
    return %c0_i32, %c0_i32_0 : i32, i32
  }
  func.func @transform_6(%arg0: i32, %arg1: i32) -> (i32, i32) {
    %c0_i32 = arith.constant 0 : i32
    %c0_i32_0 = arith.constant 0 : i32
    %c0_i32_1 = arith.constant 0 : i32
    return %c0_i32, %c0_i32_0 : i32, i32
  }
  func.func @transform_7(%arg0: i32, %arg1: i32) -> (i32, i32) {
    %c0_i32 = arith.constant 0 : i32
    %c0_i32_0 = arith.constant 0 : i32
    %c0_i32_1 = arith.constant 0 : i32
    return %c0_i32, %c0_i32_0 : i32, i32
  }
  func.func @transform_8(%arg0: i32, %arg1: i32) -> (i32, i32, i32) {
    %c0_i32 = arith.constant 0 : i32
    %c0_i32_0 = arith.constant 0 : i32
    return %arg0, %c0_i32, %arg1 : i32, i32, i32
  }
  func.func @transform_9(%arg0: i32, %arg1: i32) -> (i32, i32, i32) {
    %c0_i32 = arith.constant 0 : i32
    %c0_i32_0 = arith.constant 0 : i32
    return %arg0, %c0_i32, %arg1 : i32, i32, i32
  }
}

</mosaic_0001>

<bundles_post_ra>
// kernel: tpu_custom_call.1
= control target key start
LH: loop header
LB: loop body
LE: loop exit
PB: predicated region body
PF: predicated region fallthrough
CT: control target
= control target key end

     0   :  { %s1177_s0 = inlined_call_operand.vmem [shape: f32[2,32,16], index: 0, kind: input, shape index: {}]   ;;  %s1178_s1 = inlined_call_operand.vmem [shape: f32[4,32], index: 1, kind: input, shape index: {}]   ;;  %s1179_s2 = inlined_call_operand.vmem [shape: f32[4,1], index: 2, kind: input, shape index: {}]   ;;  %s1180_s3 = inlined_call_operand.vmem [shape: f32[32,4], index: 3, kind: input, shape index: {}]   ;;  %s1181_s4 = inlined_call_operand.vmem [shape: f32[32,1], index: 4, kind: input, shape index: {}]   ;;  %s1182_s5 = inlined_call_operand.vmem [shape: f32[4,1], index: 5, kind: input, shape index: {}]   ;;  %s1183_s6 = inlined_call_operand.vmem [shape: f32[4,1], index: 6, kind: input, shape index: {}]   ;;  %s1184_s7 = inlined_call_operand.vmem [shape: f32[4,1], index: 7, kind: input, shape index: {}]   ;;  %s1185_s8 = inlined_call_operand.vmem [shape: f32[2,32,16], index: 8, kind: output, shape index: {0}]   ;;  %s1186_s9 = inlined_call_operand.hbm [shape: s32[2,1,16], index: 9, kind: output, shape index: {1}]  }
   0x1   :  { %1188 = sst [smem:[#allocation5_spill]] %s1177_s0 }
   0x2   :  { %1189 = sst [smem:[#allocation6_spill]] %s1178_s1 }
   0x3   :  { %15 = vsyncpa [#allocation3], 0 }
   0x4   :  { %17 = vsyncpa [#allocation3 + $0x1], 0  ;;  %s1018_s30 = smov 0   ;;  %s1020_s10 = smov 0  }
   0x5   :  { %s1022_s11 = smov 0   ;;  %s1024_s12 = smov 0  }
   0x6   :  { %s1026_s13 = smov 0   ;;  %s1028_s14 = smov 0  }
   0x7 LB: > { %s762_s15 = sadd.s32 4294967295, %s961_s14   ;;  %s763_s16 = sadd.s32 4294967294, %s961_s14   ;;  %s961_s14 = sphi %s1028_s14, %s23_s14   ;;  %s957_s13 = sphi %s1026_s13, %s1199_s13   ;;  %s953_s12 = sphi %s1024_s12, %s1198_s12   ;;  %s949_s11 = sphi %s1022_s11, %s1197_s11   ;;  %s945_s10 = sphi %s1020_s10, %s1196_s10   ;;  %s941_s30 = sphi %s1018_s30, %s1195_s30  }
   0x8   : > { %s35_s17 = sadd.s32 1, %s957_s13  ;;  %s247_s18 = sadd.s32 1, %s949_s11 }
   0x9   : > { %p37_p0 = scmp.ge.s32.totalorder %s35_s17, 2  ;;  %p257_p1 = scmp.ne.s32.totalorder %s949_s11, %s945_s10 }
   0xa   : > { %p258_p2 = scmp.eq.s32.totalorder %s762_s15, 1  ;;  %p263_p3 = scmp.ne.s32.totalorder %s945_s10, %s941_s30 }
   0xb   : > { %s1201_s17 = smov (%p37_p0, %s35_s17), 0  ;;  %p264_p5 = scmp.eq.s32.totalorder %s763_s16, 1 }
   0xc   : > { %p1058_p4 = por %p258_p2, %p257_p1  ;;  %s242_s20 = ssub.s32 %s957_s13, %s1201_s17 }
   0xd   : > { %p766_p6 = scmp.ge.s32.totalorder %s961_s14, 1  ;;  %p245_p7 = scmp.eq.s32.totalorder %s242_s20, 0 }
   0xe   : > { %p1065_p8 = por %p264_p5, %p263_p3  ;;  %p314_p9 = scmp.lt.s32.totalorder %s961_s14, 3 }
   0xf   : > { %s1071_s22 = scalar_select %p245_p7, %s949_s11, %s247_s18  }
  0x10   : > { %p315_p10 = pnand %p766_p6, %p314_p9 }
  0x11   : > { %p360_p11 = scmp.lt.s32.totalorder (!%p315_p10), %s953_s12, 1  ;;  %v963_v0 = vmov (!%p315_p10), 0.0|0.0   ;;  %vm964_vm0 = vmmov (!%p315_p10), 0   ;;  %v965_v1 = vmov (!%p315_p10), 0.0   ;;  %v381_v2 = vld [vmem:[%s1179_s2] sm:$0xf] (!%p315_p10) }
  0x12   : > { %318 = sbr.rel (%p315_p10) target bundleno = 492 (0x1ec), region = 52  ;;  %811 = vmatprep.subr.bf16.mxu0 (!%p315_p10), %v963_v0  ;;  %800 = vmatprep.mubr.msk.f32.mxu0 (!%p315_p10), %vm964_vm0, %v965_v1  ;;  %v966_v3 = vmov (!%p315_p10), 0   ;;  %v469_v4 = vld [vmem:[%s1183_s6] sm:$0xf] (!%p315_p10)  ;;  %s1192_s0 = sld [smem:[#allocation5_spill]] (!%p315_p10)  ;;  %v501_v13 = vld [vmem:[%s1181_s4 + $0x8] sm:$0xff] (!%p315_p10) }
  0x13   : > { %879 = vset.pattern.permute.xlu0 (!%p315_p10), %v966_v3  ;;  %880 = vset.pattern.permute.xlu1 (!%p315_p10), %v966_v3  ;;  %v462_v5 = vld [vmem:[%s1182_s5] sm:$0xf] (!%p315_p10)  ;;  %v502_v15 = vld [vmem:[%s1181_s4 + $0x10] sm:$0xff] (!%p315_p10)  ;;  %v503_v16 = vld [vmem:[%s1181_s4 + $0x18] sm:$0xff] (!%p315_p10)  ;;  %s1193_s1 = sld [smem:[#allocation6_spill]] (!%p315_p10)  ;;  %vm387_vm1 = vcmask (!%p315_p10), 261120  }
  0x14   : > { %384 = vperm.xlu0 (!%p315_p10), %879, %v381_v2   ;;  %472 = vperm.xlu1 (!%p315_p10), %880, %v469_v4   ;;  %v477_v6 = vld [vmem:[%s1184_s7] sm:$0xf] (!%p315_p10)  ;;  %vm524_vm2 = vcmask (!%p315_p10), 31744   ;;  %vm537_vm3 = vcmask (!%p315_p10), 1043456   ;;  %vm484_vm4 = vcmask (!%p315_p10), 125952   ;;  %v497_v30 = vld [vmem:[%s1180_s3 + $0x8] sm:$0xff] (!%p315_p10) }
  0x15   : > { %v500_v12 = vld [vmem:[%s1181_s4] sm:$0xff] (!%p315_p10)  ;;  %v498_v32 = vld [vmem:[%s1180_s3 + $0x10] sm:$0xff] (!%p315_p10)  ;;  %v499_v35 = vld [vmem:[%s1180_s3 + $0x18] sm:$0xff] (!%p315_p10)  ;;  %s358_s26 = sand.u32 (!%p315_p10), 1, %s945_s10   ;;  %vm494_vm5 = vcmask (!%p315_p10), 122880   ;;  %s777_s29 = sshll.u32 (!%p315_p10), %s953_s12, 4 }
  0x16   : > { %v496_v18 = vld [vmem:[%s1180_s3] sm:$0xff] (!%p315_p10)  ;;  %s359_s27 = scalar_lea.vmem (!%p315_p10), [#allocation2], %s358_s26  ;;  %s1131_s20 = scalar_lea.hbm (!%p315_p10), %s1186_s9, %s777_s29 }
  0x17   : > { %805 = vmatprep.mubr.msk.f32.mxu1 (!%p315_p10), %vm524_vm2, %v496_v18  ;;  %s656_s15 = sshll.u32 (!%p315_p10), %s359_s27, 4  ;;  %s640_s23 = scalar_lea.sflag (!%p315_p10), [#allocation3], %s358_s26  ;;  %s657_s15 = int_to_ptr.vmem [resolvable:$true] %s656_s15 }
  0x18   : > { %465 = vperm.xlu0 (!%p315_p10), %879, %v462_v5   ;;  %480 = vperm.xlu1 (!%p315_p10), %880, %v477_v6  }
  0x19   : > { %s1078_s25 = scalar_select %p360_p11, %s953_s12, 1  ;;  %v380_v17 = vld [vmem:[%s1193_s1] sm:$0xf] }
  0x1b   : > { %s1187_s28 = sshll.u32 %s1078_s25, 5 }
  0x1c   : > { %s367_s24 = scalar_lea.vmem %s1192_s0, %s1187_s28  ;;  %506 = vperm.xlu0 %879, %v500_v12   ;;  %511 = vperm.xlu1 %880, %v501_v13   ;;  %s967_s28 = smov [#allocation2]  }
  0x1d   : > { %v376_v7 = vld [vmem:[%s367_s24] sm:$0xff]  ;;  %v377_v8 = vld [vmem:[%s367_s24 + $0x8] sm:$0xff]  ;;  %v378_v9 = vld [vmem:[%s367_s24 + $0x10] sm:$0xff]  ;;  %s887_s0 = sshll.u32 %s967_s28, 4  ;;  %s888_s0 = int_to_ptr.vmem [resolvable:$false] %s887_s0 }
  0x1e   : > { %v812_v10 = vpack.c.bf16 %v377_v8, %v376_v7  ;;  %v379_v11 = vld [vmem:[%s367_s24 + $0x18] sm:$0xff]  ;;  %s883_s24 = scalar_lea.vmem %s657_s15, 16  ;;  %s889_s1 = scalar_lea.vmem %s888_s0, 32 }
  0x1f   : > { %v815_v14 = vpack.c.bf16 %v379_v11, %v378_v9  ;;  %p884_p12 = scmp.ne.s32.totalorder %s657_s15, %s883_s24  ;;  %p890_p1 = scmp.lt.s32.totalorder %s657_s15, %s888_s0 }
  0x20   : > { %813 = vmatpush3.bf16.msra.mxu0 %v812_v10  ;;  %516 = vperm.xlu0 %879, %v502_v15   ;;  %p891_p2 = scmp.lt.s32.totalorder %s889_s1, %s883_s24 }
  0x21   : > { %814 = vmatprep.subr.bf16.mxu0 %v963_v0  ;;  %521 = vperm.xlu1 %880, %v503_v16   ;;  %p885_p13 = pnand %p884_p12, %p1058_p4 }
  0x22   : > { %p892_p3 = por %p891_p2, %p890_p1 }
  0x23   : > { %p886_p0 = pneg %p885_p13 }
  0x24   : > { %816 = vmatpush3.bf16.msra.mxu0 %v815_v14 }
  0x25   : > { %p893_p5 = pnand %p892_p3, %p886_p0 }
  0x27   : > { %801 = vmatmul.mubr.msk.f32.vlgmr.msra.gmra.mrb[0].mxu0 %vm387_vm1, %v380_v17 }
  0x93   : > { %v385_v19 = vpop.permute.xlu0 %384  ;;  %v473_v25 = vpop.permute.xlu1 %472 }
  0x97   : > { %v466_v24 = vpop.permute.xlu0 %465  ;;  %v481_v29 = vpop.permute.xlu1 %480 }
  0xfa   : > { %v457_v20 = vpop.f32.mrb[0].mxu0 }
  0xfb   : > { %v458_v21 = vadd.f32 %v457_v20, %v385_v19  ;;  %v802_v22 = vpop.f32.mrb[1].mxu0 }
  0xfd   : > { %881 = vtanh.f32 %v458_v21 }
 0x107   : > { %v882_v23 = vpop.eup %881 }
 0x108   : > { %v468_v26 = vmul.f32 %v882_v23, %v466_v24 }
 0x10a   : > { %v475_v27 = vsub.f32 %v468_v26, %v473_v25 }
 0x10c   : > { %v817_v28 = vround.rtne.f32 %v475_v27 }
 0x10e   : > { %v483_v31 = vmul.f32 %v817_v28, %v481_v29  ;;  %803 = vmatprep.subr.msk.mxu1 %vm537_vm3, %v817_v28 }
 0x10f   : > { %804 = vmatpush3.msk.msra.mxu1 %vm537_vm3, %v817_v28 }
 0x110   : > { %v485_v33 = vsel %vm484_vm4, %v483_v31, 0.0  ;;  %806 = vmatmul.mubr.msk.f32.vlgmr.msra.gmra.mrb[0].mxu1 %vm524_vm2, %v497_v30 }
 0x111   : > { %v486_v34 = vrot.slane %v485_v33, 4  ;;  %808 = vmatprep.mubr.msk.f32.mxu1 %vm524_vm2, %v498_v32 }
 0x113   : > { %v487_v36 = vadd.f32 %v486_v34, %v485_v33 }
 0x114   : > { %809 = vmatmul.mubr.msk.f32.gmra.mrb[2].mxu1 %vm524_vm2, %v499_v35 }
 0x115   : > { %v488_v37 = vrot.slane %v487_v36, 2 }
 0x117   : > { %v489_v38 = vadd.f32 %v488_v37, %v487_v36 }
 0x119   : > { %v490_v39 = vrot.slane %v489_v38, 1 }
 0x11b   : > { %v491_v40 = vadd.f32 %v490_v39, %v489_v38 }
 0x11d   : > { %v492_v41 = vadd.f32 500.0, %v491_v40 }
 0x11f   : > { %v818_v42 = vtrunc.f32 %v492_v41 }
 0x121   : > { %v819_v43 = vcvt.f32.s32 %v818_v42 }
 0x123   : > { %495 = vst.msk [vmem:[%s359_s27] sm:$0x1] %vm494_vm5, %v819_v43 }
 0x124   : > { %896 = shalt.err (!%p893_p5)
}
 0x125   : > { %s897_s12 = scalar_lea.hbm %s1131_s20, 16  ;;  %s901_s28 = scalar_lea.hbm %s1186_s9, 32 }
 0x126   : > { %p898_p6 = scmp.ne.s32.totalorder %s1131_s20, %s897_s12  ;;  %p902_p10 = scmp.lt.u32.totalorder %s1131_s20, %s1186_s9 }
 0x127   : > { %p903_p11 = scmp.lt.u32.totalorder %s901_s28, %s897_s12  ;;  %p905_p13 = scmp.lt.u32.totalorder %s897_s12, %s1131_s20 }
 0x128   : > { %p899_p7 = pnand %p898_p6, %p1058_p4 }
 0x129   : > { %p904_p12 = por %p903_p11, %p902_p10 }
 0x12a   : > { %p900_p9 = pneg %p899_p7 }
 0x12b   : > { %p906_p0 = por %p905_p13, %p904_p12 }
 0x12d   : > { %p907_p1 = pnand %p906_p0, %p900_p9 }
 0x12f   : > { %910 = shalt.err (!%p907_p1)
}
 0x130   : > { %820 = dma.vmem_to_hbm [thread:$0]  (%p1058_p4), %s657_s15, 16, %s1131_s20, %s640_s23   ;;  %v512_v44 = vpop.permute.xlu1 %511  ;;  %v507_v45 = vpop.permute.xlu0 %506  ;;  %vm626_vm6 = vcmask 130048  }
 0x131   : > { %s1194_s1 = sshll.u32 %s1078_s25, 5 }
 0x132   : > { %s375_s24 = scalar_lea.vmem %s1185_s8, %s1194_s1 }
 0x134   : > { %v522_v50 = vpop.permute.xlu1 %521  ;;  %v517_v52 = vpop.permute.xlu0 %516 }
 0x1e3   : > { %v807_v46 = vpop.f32.mrb[0].mxu1 }
 0x1e4   : > { %v613_v47 = vadd.f32 %v807_v46, %v512_v44  ;;  %v607_v48 = vpop.f32.mrb[1].mxu1 }
 0x1e5   : > { %v608_v49 = vadd.f32 %v607_v48, %v507_v45 }
 0x1e6   : > { %628 = vst.msk [vmem:[%s375_s24 + $0x8] sm:$0xff] %vm626_vm6, %v613_v47 }
 0x1e7   : > { %627 = vst.msk [vmem:[%s375_s24] sm:$0xff] %vm626_vm6, %v608_v49  ;;  %v810_v51 = vpop.f32.mrb[2].mxu1 }
 0x1e8   : > { %v623_v53 = vadd.f32 %v810_v51, %v522_v50  ;;  %v617_v54 = vpop.f32.mrb[3].mxu1 }
 0x1e9   : > { %v618_v55 = vadd.f32 %v617_v54, %v517_v52 }
 0x1ea   : > { %630 = vst.msk [vmem:[%s375_s24 + $0x18] sm:$0xff] %vm626_vm6, %v623_v53 }
 0x1eb   : > { %629 = vst.msk [vmem:[%s375_s24 + $0x10] sm:$0xff] %vm626_vm6, %v618_v55 }
 0x1ec PF: > { %p826_p4 = scmp.ge.s32.totalorder %s961_s14, 2  ;;  %s679_s19 = sand.u32 1, %s941_s30  }
 0x1ed   : > { %s680_s25 = scalar_lea.sflag [#allocation3], %s679_s19 }
 0x1ee   : > { %p823_p2 = pnand %p826_p4, %p1065_p8 }
 0x1f0   : > { %936 = dma.done.wait (!%p823_p2), %s680_s25, 16  }
 0x1f1   : > { %938 = vsyncadd (!%p823_p2), %s680_s25, 4294967280  ;;  %s23_s14 = sadd.s32 1, %s961_s14   ;;  %s1195_s30 = smov %s945_s10 }
 0x1f2   : > { %p20_p3 = scmp.ge.s32.totalorder %s23_s14, 4   ;;  %s1196_s10 = smov %s949_s11 }
 0x1f3   : > { %s1197_s11 = smov %s1071_s22  ;;  %s1198_s12 = smov %s957_s13 }
 0x1f4   : > { %s1199_s13 = smov %s1201_s17  ;;  %22 = sbr.rel (!%p20_p3) target bundleno = 7 (0x7), region = 99 }
 0x1fb   :  { %684 = vsyncpa [#allocation3], 1 }
 0x1fc   :  { %686 = vsyncpa [#allocation3 + $0x1], 1 }

</bundles_post_ra>
